<compile_context>
chip_gen: v5e
topology: v5e:2x2
jax: 0.10.0
libtpu: 0.0.40
codegen_flags: <defaults>
</compile_context>

<pallas_src>
import jax
import jax.numpy as jnp
from jax import lax
from jax.experimental import pallas as pl
from jax.experimental.pallas import tpu as pltpu

# ----------------------------------------------------------------------------
# Synthetic config (the real repo builds these from a yaml/edict config).
# ----------------------------------------------------------------------------
BATCH = 2
IN_CH = 3                      # rgb frames (main + aux input)
INPUT_SHAPE = (16, 16)         # config.input_shape[0:2] -> decoder output spatial size
UPSAMPLE_LAYER = 2             # config.upsample_layer
MIN_CHANNEL_NUMBER = 8         # config.min_channel_number
MAX_CHANNEL_NUMBER = 256       # config.max_channel_number
STAGE_CHANNELS = (8, 16)       # backbone feature channels per (stride-2) stage
DECODER_OUT = 3                # decoder out_channels=3 (hard coded in the module)

MID_C = min(max(STAGE_CHANNELS[UPSAMPLE_LAYER - 1], MIN_CHANNEL_NUMBER),
            MAX_CHANNEL_NUMBER)   # midnet_out_channels

# per-image padded decoder channel width so the fused decoder output is lane-dense (128 lanes)
DEC_PAD_C = (128 // BATCH) if (128 % BATCH == 0 and (128 // BATCH) >= DECODER_OUT) else DECODER_OUT


# ----------------------------------------------------------------------------
# Pallas kernels (single launch each; no batch grid — batch folded into rows)
# ----------------------------------------------------------------------------
def _stage_pair_kernel(p_ref, wm_ref, bm_ref, wa_ref, ba_ref, o_ref):
    """One backbone stage for main AND aux streams in one launch.

    p_ref : (2*B*N, K)  im2col patches; first half rows = main images, second half = aux.
    wm/wa : (K, M) flattened 3x3 conv weights, bm/ba: (1, M).
    o_ref : (2*B*N, M)
    """
    p = p_ref[...]
    half = p.shape[0] // 2
    ym = jnp.dot(p[:half], wm_ref[...], preferred_element_type=jnp.float32) + bm_ref[...]
    ya = jnp.dot(p[half:], wa_ref[...], preferred_element_type=jnp.float32) + ba_ref[...]
    y = jnp.concatenate([jnp.maximum(ym, 0.0), jnp.maximum(ya, 0.0)], axis=0)
    o_ref[...] = y.astype(o_ref.dtype)


def _mid_dec_kernel(f_ref, wcat_ref, bmid_ref, wdecp_ref, u_ref, brp_ref, o_ref):
    """Fused midnet (transform_panet2-style |diff| fusion) + decoder (1x1 conv + bilinear).

    f_ref    : (2*B*hw, C)   layer-`upsample_layer` features; first half = main, second = aux
    wcat_ref : (2*C, MID_C)  [w_same; w_diff] stacked — single MXU dot for the fusion
    bmid_ref : (1, MID_C)
    wdecp_ref: (MID_C, CP)   1x1 decoder weight zero-padded to CP lanes (CP*B == 128)
    u_ref    : (H*W, hw)     kron(R_h, R_w) bilinear-upsample matrix (align_corners=False)
    brp_ref  : (1, B*CP)     decoder bias replicated per batch block, zero-padded
    o_ref    : (H*W, B*CP)   lane-dense output; batch b occupies lanes [b*CP, b*CP+3)
    """
    f = f_ref[...]
    half = f.shape[0] // 2           # B*hw
    hw = u_ref.shape[1]              # feature spatial size per image
    nb = half // hw                  # batch
    fm = f[:half]
    fa = f[half:]
    x = jnp.concatenate([fm, jnp.abs(fm - fa)], axis=-1)                      # (B*hw, 2C)
    fused = jnp.maximum(
        jnp.dot(x, wcat_ref[...], preferred_element_type=jnp.float32) + bmid_ref[...], 0.0)
    z = jnp.dot(fused, wdecp_ref[...], preferred_element_type=jnp.float32)    # (B*hw, CP)
    # pack per-batch blocks along lanes -> (hw, B*CP) = (hw, 128), then upsample with one dot
    z2 = jnp.concatenate([z[b * hw:(b + 1) * hw, :] for b in range(nb)], axis=-1)
    y = jnp.dot(u_ref[...], z2, preferred_element_type=jnp.float32) + brp_ref[...]
    o_ref[...] = y.astype(o_ref.dtype)


# ----------------------------------------------------------------------------
# pallas_call wrappers (grid=(1,): single step, no per-batch grid loop)
# ----------------------------------------------------------------------------
def stage_pair_forward(p2, wm, bm, wa, ba):
    rows, K = p2.shape
    M = wm.shape[1]
    return pl.pallas_call(
        _stage_pair_kernel,
        out_shape=jax.ShapeDtypeStruct((rows, M), jnp.float32),
        grid=(1,),
        in_specs=[
            pl.BlockSpec((rows, K), lambda i: (0, 0)),
            pl.BlockSpec((K, M), lambda i: (0, 0)),
            pl.BlockSpec((1, M), lambda i: (0, 0)),
            pl.BlockSpec((K, M), lambda i: (0, 0)),
            pl.BlockSpec((1, M), lambda i: (0, 0)),
        ],
        out_specs=pl.BlockSpec((rows, M), lambda i: (0, 0)),
        compiler_params=pltpu.CompilerParams(dimension_semantics=("arbitrary",)),
    )(p2, wm, bm, wa, ba)


def mid_dec_forward(f, wcat, bmid, wdecp, u, brp):
    rows, C = f.shape
    twoc, midc = wcat.shape
    cp = wdecp.shape[1]
    HW, hw = u.shape
    bcp = brp.shape[1]
    return pl.pallas_call(
        _mid_dec_kernel,
        out_shape=jax.ShapeDtypeStruct((HW, bcp), jnp.float32),
        grid=(1,),
        in_specs=[
            pl.BlockSpec((rows, C), lambda i: (0, 0)),
            pl.BlockSpec((twoc, midc), lambda i: (0, 0)),
            pl.BlockSpec((1, midc), lambda i: (0, 0)),
            pl.BlockSpec((midc, cp), lambda i: (0, 0)),
            pl.BlockSpec((HW, hw), lambda i: (0, 0)),
            pl.BlockSpec((1, bcp), lambda i: (0, 0)),
        ],
        out_specs=pl.BlockSpec((HW, bcp), lambda i: (0, 0)),
        compiler_params=pltpu.CompilerParams(dimension_semantics=("arbitrary",)),
    )(f, wcat, bmid, wdecp, u, brp)


# ----------------------------------------------------------------------------
# Plain-JAX glue (layout, im2col) and hoisted constants
# ----------------------------------------------------------------------------
def im2col_stride2(x_nhwc):
    """3x3, pad=1, stride=2 im2col: (N,H,W,C) -> (N, (H//2)*(W//2), 9*C)."""
    N, H, W, C = x_nhwc.shape
    Ho, Wo = H // 2, W // 2
    xp = jnp.pad(x_nhwc, ((0, 0), (1, 1), (1, 1), (0, 0)))
    taps = []
    for dy in range(3):
        for dx in range(3):
            taps.append(xp[:, dy:dy + H:2, dx:dx + W:2, :])   # (N, Ho, Wo, C)
    patches = jnp.concatenate(taps, axis=-1)                   # (N, Ho, Wo, 9C)
    return patches.reshape(N, Ho * Wo, 9 * C)


def bilinear_matrix(out_size, in_size):
    """Row-interpolation matrix matching F.interpolate(bilinear, align_corners=False)."""
    i = jnp.arange(out_size, dtype=jnp.float32)
    src = (i + 0.5) * (in_size / out_size) - 0.5
    src = jnp.clip(src, 0.0, in_size - 1.0)
    i0f = jnp.floor(src)
    t = src - i0f
    i0 = i0f.astype(jnp.int32)
    i1 = jnp.minimum(i0 + 1, in_size - 1)
    m = jnp.zeros((out_size, in_size), jnp.float32)
    m = m.at[jnp.arange(out_size), i0].add(1.0 - t)
    m = m.at[jnp.arange(out_size), i1].add(t)
    return m


def init_params(key):
    """Raw (torch-like) parameters."""
    ks = jax.random.split(key, 8)

    def conv_w(k, cin, cout):
        fan_in = 9 * cin
        return jax.random.normal(k, (3, 3, cin, cout), jnp.float32) / jnp.sqrt(
            jnp.float32(fan_in))

    def lin_w(k, cin, cout):
        return jax.random.normal(k, (cin, cout), jnp.float32) / jnp.sqrt(jnp.float32(cin))

    main_stages, aux_stages = [], []
    cin, ki = IN_CH, 0
    for cout in STAGE_CHANNELS:
        main_stages.append({'w': conv_w(ks[ki], cin, cout),
                            'b': jnp.zeros((cout,), jnp.float32)})
        aux_stages.append({'w': conv_w(ks[ki + 1], cin, cout),
                           'b': jnp.zeros((cout,), jnp.float32)})
        cin = cout
        ki += 2

    feat_c = STAGE_CHANNELS[UPSAMPLE_LAYER - 1]
    return {
        'main_backbone': main_stages,
        'aux_backbone': aux_stages,          # separate weights (use_aux_input=True path)
        'midnet': {
            'w_same': lin_w(ks[4], feat_c, MID_C),
            'w_diff': lin_w(ks[5], feat_c, MID_C),
            'b': jnp.zeros((MID_C,), jnp.float32),
        },
        'decoder': {
            'w': lin_w(ks[6], MID_C, DECODER_OUT),
            'b': 0.1 * jax.random.normal(ks[7], (DECODER_OUT,), jnp.float32),
        },
    }


def build_pallas_constants(params):
    """Hoist ALL weight-derived math out of the traced forward (computed once)."""
    stages = []
    for ms, au in zip(params['main_backbone'], params['aux_backbone']):
        cin, cout = ms['w'].shape[2], ms['w'].shape[3]
        stages.append({
            'wm': ms['w'].reshape(9 * cin, cout),
            'bm': ms['b'][None, :],
            'wa': au['w'].reshape(9 * cin, cout),
            'ba': au['b'][None, :],
        })

    wcat = jnp.concatenate([params['midnet']['w_same'], params['midnet']['w_diff']], axis=0)
    bmid = params['midnet']['b'][None, :]

    H_out, W_out = INPUT_SHAPE
    h = INPUT_SHAPE[0] >> UPSAMPLE_LAYER
    w = INPUT_SHAPE[1] >> UPSAMPLE_LAYER
    rmat = bilinear_matrix(H_out, h)                    # (H, h)
    cmat = bilinear_matrix(W_out, w)                    # (W, w)
    u = jnp.kron(rmat, cmat)                            # (H*W, h*w)

    wdec = params['decoder']['w']                       # (MID_C, 3)
    wdecp = jnp.zeros((MID_C, DEC_PAD_C), jnp.float32).at[:, :DECODER_OUT].set(wdec)
    brp = jnp.zeros((1, BATCH * DEC_PAD_C), jnp.float32)
    for b in range(BATCH):
        brp = brp.at[0, b * DEC_PAD_C:b * DEC_PAD_C + DECODER_OUT].set(params['decoder']['b'])

    return {'stages': stages, 'wcat': wcat, 'bmid': bmid,
            'wdecp': wdecp, 'u': u, 'brp': brp}


def motion_diff_forward(consts, imgs):
    """Pallas forward. imgs = [img0, img1], each NCHW float32. `consts` from build_pallas_constants."""
    img0 = jnp.transpose(imgs[0], (0, 2, 3, 1))   # NCHW -> NHWC
    img1 = jnp.transpose(imgs[1], (0, 2, 3, 1))
    x = jnp.concatenate([img0, img1], axis=0)     # (2B, H, W, C): main batch then aux batch

    # backbone (forward_layers up to upsample_layer), main+aux fused per stage
    for st in consts['stages'][:UPSAMPLE_LAYER]:
        n2b, H, W, C = x.shape
        patches = im2col_stride2(x).reshape(n2b * (H // 2) * (W // 2), 9 * C)
        o = stage_pair_forward(patches, st['wm'], st['bm'], st['wa'], st['ba'])
        x = o.reshape(n2b, H // 2, W // 2, st['wm'].shape[1])

    n2b, h, w, Cf = x.shape
    B = n2b // 2
    f = x.reshape(n2b * h * w, Cf)                # rows: [main b0, main b1, aux b0, aux b1]

    # fused midnet + decoder (intermediate never leaves VMEM); lane-dense (H*W, 128) output
    out2 = mid_dec_forward(f, consts['wcat'], consts['bmid'],
                           consts['wdecp'], consts['u'], consts['brp'])

    H_out, W_out = INPUT_SHAPE
    cols = [out2[:, b * DEC_PAD_C:b * DEC_PAD_C + DECODER_OUT] for b in range(B)]
    y = jnp.stack(cols, axis=0).reshape(B, H_out, W_out, DECODER_OUT).transpose(0, 3, 1, 2)
    return {'masks': [y]}


def motion_diff_reference(params, imgs):
    """Pure-jnp reference (conv + 1x1 fusion + explicit bilinear einsum) for validation."""
    img0 = jnp.transpose(imgs[0], (0, 2, 3, 1))
    img1 = jnp.transpose(imgs[1], (0, 2, 3, 1))

    def backbone(x, stages):
        for st in stages[:UPSAMPLE_LAYER]:
            x = lax.conv_general_dilated(x, st['w'], window_strides=(2, 2),
                                         padding=((1, 1), (1, 1)),
                                         dimension_numbers=('NHWC', 'HWIO', 'NHWC'))
            x = jnp.maximum(x + st['b'], 0.0)
        return x

    fm = backbone(img0, params['main_backbone'])
    fa = backbone(img1, params['aux_backbone'])
    diff = jnp.abs(fm - fa)
    fused = jnp.maximum(
        jnp.einsum('bhwc,cm->bhwm', fm, params['midnet']['w_same'])
        + jnp.einsum('bhwc,cm->bhwm', diff, params['midnet']['w_diff'])
        + params['midnet']['b'], 0.0)
    z = jnp.einsum('bhwc,co->bhwo', fused, params['decoder']['w']) + params['decoder']['b']
    H_out, W_out = INPUT_SHAPE
    rmat = bilinear_matrix(H_out, z.shape[1])
    cmat = bilinear_matrix(W_out, z.shape[2])
    y = jnp.einsum('Yh,Xw,bhwo->bYXo', rmat, cmat, z)
    return {'masks': [y.transpose(0, 3, 1, 2)]}


# ----------------------------------------------------------------------------
if __name__ == "__main__":
    key = jax.random.PRNGKey(0)
    k_params, k_img0, k_img1 = jax.random.split(key, 3)
    params = init_params(k_params)
    consts = build_pallas_constants(params)     # hoisted once, outside the traced forward

    img0 = jax.random.normal(k_img0, (BATCH, IN_CH) + INPUT_SHAPE, jnp.float32)
    img1 = jax.random.normal(k_img1, (BATCH, IN_CH) + INPUT_SHAPE, jnp.float32)

    fwd = jax.jit(lambda c, a, b: motion_diff_forward(c, [a, b]))
    out = fwd(consts, img0, img1)
    y = out['masks'][0]
    jax.block_until_ready(y)

    assert y.shape == (BATCH, DECODER_OUT) + INPUT_SHAPE, y.shape
    assert bool(jnp.all(jnp.isfinite(y)))

    y_ref = motion_diff_reference(params, [img0, img1])['masks'][0]
    assert bool(jnp.allclose(y, y_ref, rtol=1e-3, atol=1e-3)), "mismatch vs jnp reference"

    print("KERNEL_OK")
</pallas_src>

<mosaic_0001>
module attributes {stable_mosaic.version = 11 : i64} {
  func.func @_stage_pair_kernel(%arg0: i32, %arg1: memref<256x27xf32, #tpu.memory_space<vmem>>, %arg2: memref<27x8xf32, #tpu.memory_space<vmem>>, %arg3: memref<1x8xf32, #tpu.memory_space<vmem>>, %arg4: memref<27x8xf32, #tpu.memory_space<vmem>>, %arg5: memref<1x8xf32, #tpu.memory_space<vmem>>, %arg6: memref<256x8xf32, #tpu.memory_space<vmem>>) attributes {dimension_semantics = [#tpu.dimension_semantics<arbitrary>], iteration_bounds = array<i64: 1>, scalar_prefetch = 0 : i64, scratch_operands = 0 : i64, tpu.core_type = #tpu.core_type<tc>, window_params = [{pipeline_mode = #tpu.pipeline_mode<synchronous>, transform_indices = @transform_0, window_bounds = array<i64: 256, 27>}, {pipeline_mode = #tpu.pipeline_mode<synchronous>, transform_indices = @transform_1, window_bounds = array<i64: 27, 8>}, {pipeline_mode = #tpu.pipeline_mode<synchronous>, transform_indices = @transform_2, window_bounds = array<i64: 1, 8>}, {pipeline_mode = #tpu.pipeline_mode<synchronous>, transform_indices = @transform_3, window_bounds = array<i64: 27, 8>}, {pipeline_mode = #tpu.pipeline_mode<synchronous>, transform_indices = @transform_4, window_bounds = array<i64: 1, 8>}, {pipeline_mode = #tpu.pipeline_mode<synchronous>, transform_indices = @transform_5, window_bounds = array<i64: 256, 8>}]} {
    %c0 = arith.constant 0 : index
    %c0_0 = arith.constant 0 : index
    %0 = vector.load %arg1[%c0, %c0_0] : memref<256x27xf32, #tpu.memory_space<vmem>>, vector<256x27xf32>
    %1 = vector.extract_strided_slice %0 {offsets = [0, 0], sizes = [128, 27], strides = [1, 1]} : vector<256x27xf32> to vector<128x27xf32>
    %c0_1 = arith.constant 0 : index
    %c0_2 = arith.constant 0 : index
    %2 = vector.load %arg2[%c0_1, %c0_2] : memref<27x8xf32, #tpu.memory_space<vmem>>, vector<27x8xf32>
    %cst = arith.constant dense<0.000000e+00> : vector<128x8xf32>
    %3 = tpu.matmul %1, %2, %cst {dimension_numbers = #tpu.dot_dimension_numbers<[1], [0], [0], [1], [0, 0, 1, 1], [], []>} : vector<128x27xf32>, vector<27x8xf32>, vector<128x8xf32> -> vector<128x8xf32>
    %c0_3 = arith.constant 0 : index
    %c0_4 = arith.constant 0 : index
    %4 = vector.load %arg3[%c0_3, %c0_4] : memref<1x8xf32, #tpu.memory_space<vmem>>, vector<1x8xf32>
    %5 = vector.broadcast %4 : vector<1x8xf32> to vector<128x8xf32>
    %6 = arith.addf %3, %5 : vector<128x8xf32>
    %7 = vector.extract_strided_slice %0 {offsets = [128, 0], sizes = [128, 27], strides = [1, 1]} : vector<256x27xf32> to vector<128x27xf32>
    %c0_5 = arith.constant 0 : index
    %c0_6 = arith.constant 0 : index
    %8 = vector.load %arg4[%c0_5, %c0_6] : memref<27x8xf32, #tpu.memory_space<vmem>>, vector<27x8xf32>
    %cst_7 = arith.constant dense<0.000000e+00> : vector<128x8xf32>
    %9 = tpu.matmul %7, %8, %cst_7 {dimension_numbers = #tpu.dot_dimension_numbers<[1], [0], [0], [1], [0, 0, 1, 1], [], []>} : vector<128x27xf32>, vector<27x8xf32>, vector<128x8xf32> -> vector<128x8xf32>
    %c0_8 = arith.constant 0 : index
    %c0_9 = arith.constant 0 : index
    %10 = vector.load %arg5[%c0_8, %c0_9] : memref<1x8xf32, #tpu.memory_space<vmem>>, vector<1x8xf32>
    %11 = vector.broadcast %10 : vector<1x8xf32> to vector<128x8xf32>
    %12 = arith.addf %9, %11 : vector<128x8xf32>
    %cst_10 = arith.constant 0.000000e+00 : f32
    %13 = vector.broadcast %cst_10 : f32 to vector<128x8xf32>
    %14 = arith.maximumf %6, %13 : vector<128x8xf32>
    %cst_11 = arith.constant 0.000000e+00 : f32
    %15 = vector.broadcast %cst_11 : f32 to vector<128x8xf32>
    %16 = arith.maximumf %12, %15 : vector<128x8xf32>
    %17 = tpu.concatenate %14, %16 in 0 : vector<128x8xf32>, vector<128x8xf32> -> vector<256x8xf32>
    %c0_12 = arith.constant 0 : index
    %c0_13 = arith.constant 0 : index
    %18 = vector.load %arg6[%c0_12, %c0_13] : memref<256x8xf32, #tpu.memory_space<vmem>>, vector<256x8xf32>
    tpu.vector_store %arg6[%c0_12, %c0_13], %17 {strides = array<i32>} : memref<256x8xf32, #tpu.memory_space<vmem>>, vector<256x8xf32>,
    return
  }
  func.func @transform_0(%arg0: i32) -> (i32, i32) {
    %c0_i32 = arith.constant 0 : i32
    %c0_i32_0 = arith.constant 0 : i32
    %c0_i32_1 = arith.constant 0 : i32
    return %c0_i32, %c0_i32_0 : i32, i32
  }
  func.func @transform_1(%arg0: i32) -> (i32, i32) {
    %c0_i32 = arith.constant 0 : i32
    %c0_i32_0 = arith.constant 0 : i32
    %c0_i32_1 = arith.constant 0 : i32
    return %c0_i32, %c0_i32_0 : i32, i32
  }
  func.func @transform_2(%arg0: i32) -> (i32, i32) {
    %c0_i32 = arith.constant 0 : i32
    %c0_i32_0 = arith.constant 0 : i32
    %c0_i32_1 = arith.constant 0 : i32
    return %c0_i32, %c0_i32_0 : i32, i32
  }
  func.func @transform_3(%arg0: i32) -> (i32, i32) {
    %c0_i32 = arith.constant 0 : i32
    %c0_i32_0 = arith.constant 0 : i32
    %c0_i32_1 = arith.constant 0 : i32
    return %c0_i32, %c0_i32_0 : i32, i32
  }
  func.func @transform_4(%arg0: i32) -> (i32, i32) {
    %c0_i32 = arith.constant 0 : i32
    %c0_i32_0 = arith.constant 0 : i32
    %c0_i32_1 = arith.constant 0 : i32
    return %c0_i32, %c0_i32_0 : i32, i32
  }
  func.func @transform_5(%arg0: i32) -> (i32, i32) {
    %c0_i32 = arith.constant 0 : i32
    %c0_i32_0 = arith.constant 0 : i32
    %c0_i32_1 = arith.constant 0 : i32
    return %c0_i32, %c0_i32_0 : i32, i32
  }
}

module attributes {stable_mosaic.version = 11 : i64} {
  func.func @_stage_pair_kernel(%arg0: i32, %arg1: memref<64x72xf32, #tpu.memory_space<vmem>>, %arg2: memref<72x16xf32, #tpu.memory_space<vmem>>, %arg3: memref<1x16xf32, #tpu.memory_space<vmem>>, %arg4: memref<72x16xf32, #tpu.memory_space<vmem>>, %arg5: memref<1x16xf32, #tpu.memory_space<vmem>>, %arg6: memref<64x16xf32, #tpu.memory_space<vmem>>) attributes {dimension_semantics = [#tpu.dimension_semantics<arbitrary>], iteration_bounds = array<i64: 1>, scalar_prefetch = 0 : i64, scratch_operands = 0 : i64, tpu.core_type = #tpu.core_type<tc>, window_params = [{pipeline_mode = #tpu.pipeline_mode<synchronous>, transform_indices = @transform_0, window_bounds = array<i64: 64, 72>}, {pipeline_mode = #tpu.pipeline_mode<synchronous>, transform_indices = @transform_1, window_bounds = array<i64: 72, 16>}, {pipeline_mode = #tpu.pipeline_mode<synchronous>, transform_indices = @transform_2, window_bounds = array<i64: 1, 16>}, {pipeline_mode = #tpu.pipeline_mode<synchronous>, transform_indices = @transform_3, window_bounds = array<i64: 72, 16>}, {pipeline_mode = #tpu.pipeline_mode<synchronous>, transform_indices = @transform_4, window_bounds = array<i64: 1, 16>}, {pipeline_mode = #tpu.pipeline_mode<synchronous>, transform_indices = @transform_5, window_bounds = array<i64: 64, 16>}]} {
    %c0 = arith.constant 0 : index
    %c0_0 = arith.constant 0 : index
    %0 = vector.load %arg1[%c0, %c0_0] : memref<64x72xf32, #tpu.memory_space<vmem>>, vector<64x72xf32>
    %1 = vector.extract_strided_slice %0 {offsets = [0, 0], sizes = [32, 72], strides = [1, 1]} : vector<64x72xf32> to vector<32x72xf32>
    %c0_1 = arith.constant 0 : index
    %c0_2 = arith.constant 0 : index
    %2 = vector.load %arg2[%c0_1, %c0_2] : memref<72x16xf32, #tpu.memory_space<vmem>>, vector<72x16xf32>
    %cst = arith.constant dense<0.000000e+00> : vector<32x16xf32>
    %3 = tpu.matmul %1, %2, %cst {dimension_numbers = #tpu.dot_dimension_numbers<[1], [0], [0], [1], [0, 0, 1, 1], [], []>} : vector<32x72xf32>, vector<72x16xf32>, vector<32x16xf32> -> vector<32x16xf32>
    %c0_3 = arith.constant 0 : index
    %c0_4 = arith.constant 0 : index
    %4 = vector.load %arg3[%c0_3, %c0_4] : memref<1x16xf32, #tpu.memory_space<vmem>>, vector<1x16xf32>
    %5 = vector.broadcast %4 : vector<1x16xf32> to vector<32x16xf32>
    %6 = arith.addf %3, %5 : vector<32x16xf32>
    %7 = vector.extract_strided_slice %0 {offsets = [32, 0], sizes = [32, 72], strides = [1, 1]} : vector<64x72xf32> to vector<32x72xf32>
    %c0_5 = arith.constant 0 : index
    %c0_6 = arith.constant 0 : index
    %8 = vector.load %arg4[%c0_5, %c0_6] : memref<72x16xf32, #tpu.memory_space<vmem>>, vector<72x16xf32>
    %cst_7 = arith.constant dense<0.000000e+00> : vector<32x16xf32>
    %9 = tpu.matmul %7, %8, %cst_7 {dimension_numbers = #tpu.dot_dimension_numbers<[1], [0], [0], [1], [0, 0, 1, 1], [], []>} : vector<32x72xf32>, vector<72x16xf32>, vector<32x16xf32> -> vector<32x16xf32>
    %c0_8 = arith.constant 0 : index
    %c0_9 = arith.constant 0 : index
    %10 = vector.load %arg5[%c0_8, %c0_9] : memref<1x16xf32, #tpu.memory_space<vmem>>, vector<1x16xf32>
    %11 = vector.broadcast %10 : vector<1x16xf32> to vector<32x16xf32>
    %12 = arith.addf %9, %11 : vector<32x16xf32>
    %cst_10 = arith.constant 0.000000e+00 : f32
    %13 = vector.broadcast %cst_10 : f32 to vector<32x16xf32>
    %14 = arith.maximumf %6, %13 : vector<32x16xf32>
    %cst_11 = arith.constant 0.000000e+00 : f32
    %15 = vector.broadcast %cst_11 : f32 to vector<32x16xf32>
    %16 = arith.maximumf %12, %15 : vector<32x16xf32>
    %17 = tpu.concatenate %14, %16 in 0 : vector<32x16xf32>, vector<32x16xf32> -> vector<64x16xf32>
    %c0_12 = arith.constant 0 : index
    %c0_13 = arith.constant 0 : index
    %18 = vector.load %arg6[%c0_12, %c0_13] : memref<64x16xf32, #tpu.memory_space<vmem>>, vector<64x16xf32>
    tpu.vector_store %arg6[%c0_12, %c0_13], %17 {strides = array<i32>} : memref<64x16xf32, #tpu.memory_space<vmem>>, vector<64x16xf32>,
    return
  }
  func.func @transform_0(%arg0: i32) -> (i32, i32) {
    %c0_i32 = arith.constant 0 : i32
    %c0_i32_0 = arith.constant 0 : i32
    %c0_i32_1 = arith.constant 0 : i32
    return %c0_i32, %c0_i32_0 : i32, i32
  }
  func.func @transform_1(%arg0: i32) -> (i32, i32) {
    %c0_i32 = arith.constant 0 : i32
    %c0_i32_0 = arith.constant 0 : i32
    %c0_i32_1 = arith.constant 0 : i32
    return %c0_i32, %c0_i32_0 : i32, i32
  }
  func.func @transform_2(%arg0: i32) -> (i32, i32) {
    %c0_i32 = arith.constant 0 : i32
    %c0_i32_0 = arith.constant 0 : i32
    %c0_i32_1 = arith.constant 0 : i32
    return %c0_i32, %c0_i32_0 : i32, i32
  }
  func.func @transform_3(%arg0: i32) -> (i32, i32) {
    %c0_i32 = arith.constant 0 : i32
    %c0_i32_0 = arith.constant 0 : i32
    %c0_i32_1 = arith.constant 0 : i32
    return %c0_i32, %c0_i32_0 : i32, i32
  }
  func.func @transform_4(%arg0: i32) -> (i32, i32) {
    %c0_i32 = arith.constant 0 : i32
    %c0_i32_0 = arith.constant 0 : i32
    %c0_i32_1 = arith.constant 0 : i32
    return %c0_i32, %c0_i32_0 : i32, i32
  }
  func.func @transform_5(%arg0: i32) -> (i32, i32) {
    %c0_i32 = arith.constant 0 : i32
    %c0_i32_0 = arith.constant 0 : i32
    %c0_i32_1 = arith.constant 0 : i32
    return %c0_i32, %c0_i32_0 : i32, i32
  }
}

module attributes {stable_mosaic.version = 11 : i64} {
  func.func @_mid_dec_kernel(%arg0: i32, %arg1: memref<64x16xf32, #tpu.memory_space<vmem>>, %arg2: memref<32x16xf32, #tpu.memory_space<vmem>>, %arg3: memref<1x16xf32, #tpu.memory_space<vmem>>, %arg4: memref<16x64xf32, #tpu.memory_space<vmem>>, %arg5: memref<256x16xf32, #tpu.memory_space<vmem>>, %arg6: memref<1x128xf32, #tpu.memory_space<vmem>>, %arg7: memref<256x128xf32, #tpu.memory_space<vmem>>) attributes {dimension_semantics = [#tpu.dimension_semantics<arbitrary>], iteration_bounds = array<i64: 1>, scalar_prefetch = 0 : i64, scratch_operands = 0 : i64, tpu.core_type = #tpu.core_type<tc>, window_params = [{pipeline_mode = #tpu.pipeline_mode<synchronous>, transform_indices = @transform_0, window_bounds = array<i64: 64, 16>}, {pipeline_mode = #tpu.pipeline_mode<synchronous>, transform_indices = @transform_1, window_bounds = array<i64: 32, 16>}, {pipeline_mode = #tpu.pipeline_mode<synchronous>, transform_indices = @transform_2, window_bounds = array<i64: 1, 16>}, {pipeline_mode = #tpu.pipeline_mode<synchronous>, transform_indices = @transform_3, window_bounds = array<i64: 16, 64>}, {pipeline_mode = #tpu.pipeline_mode<synchronous>, transform_indices = @transform_4, window_bounds = array<i64: 256, 16>}, {pipeline_mode = #tpu.pipeline_mode<synchronous>, transform_indices = @transform_5, window_bounds = array<i64: 1, 128>}, {pipeline_mode = #tpu.pipeline_mode<synchronous>, transform_indices = @transform_6, window_bounds = array<i64: 256, 128>}]} {
    %c0 = arith.constant 0 : index
    %c0_0 = arith.constant 0 : index
    %0 = vector.load %arg1[%c0, %c0_0] : memref<64x16xf32, #tpu.memory_space<vmem>>, vector<64x16xf32>
    %1 = vector.extract_strided_slice %0 {offsets = [0, 0], sizes = [32, 16], strides = [1, 1]} : vector<64x16xf32> to vector<32x16xf32>
    %2 = vector.extract_strided_slice %0 {offsets = [32, 0], sizes = [32, 16], strides = [1, 1]} : vector<64x16xf32> to vector<32x16xf32>
    %3 = arith.subf %1, %2 : vector<32x16xf32>
    %4 = math.absf %3 : vector<32x16xf32>
    %5 = tpu.concatenate %1, %4 in 1 : vector<32x16xf32>, vector<32x16xf32> -> vector<32x32xf32>
    %c0_1 = arith.constant 0 : index
    %c0_2 = arith.constant 0 : index
    %6 = vector.load %arg2[%c0_1, %c0_2] : memref<32x16xf32, #tpu.memory_space<vmem>>, vector<32x16xf32>
    %cst = arith.constant dense<0.000000e+00> : vector<32x16xf32>
    %7 = tpu.matmul %5, %6, %cst {dimension_numbers = #tpu.dot_dimension_numbers<[1], [0], [0], [1], [0, 0, 1, 1], [], []>} : vector<32x32xf32>, vector<32x16xf32>, vector<32x16xf32> -> vector<32x16xf32>
    %c0_3 = arith.constant 0 : index
    %c0_4 = arith.constant 0 : index
    %8 = vector.load %arg3[%c0_3, %c0_4] : memref<1x16xf32, #tpu.memory_space<vmem>>, vector<1x16xf32>
    %9 = vector.broadcast %8 : vector<1x16xf32> to vector<32x16xf32>
    %10 = arith.addf %7, %9 : vector<32x16xf32>
    %cst_5 = arith.constant 0.000000e+00 : f32
    %11 = vector.broadcast %cst_5 : f32 to vector<32x16xf32>
    %12 = arith.maximumf %10, %11 : vector<32x16xf32>
    %c0_6 = arith.constant 0 : index
    %c0_7 = arith.constant 0 : index
    %13 = vector.load %arg4[%c0_6, %c0_7] : memref<16x64xf32, #tpu.memory_space<vmem>>, vector<16x64xf32>
    %cst_8 = arith.constant dense<0.000000e+00> : vector<32x64xf32>
    %14 = tpu.matmul %12, %13, %cst_8 {dimension_numbers = #tpu.dot_dimension_numbers<[1], [0], [0], [1], [0, 0, 1, 1], [], []>} : vector<32x16xf32>, vector<16x64xf32>, vector<32x64xf32> -> vector<32x64xf32>
    %15 = vector.extract_strided_slice %14 {offsets = [0, 0], sizes = [16, 64], strides = [1, 1]} : vector<32x64xf32> to vector<16x64xf32>
    %16 = vector.extract_strided_slice %14 {offsets = [16, 0], sizes = [16, 64], strides = [1, 1]} : vector<32x64xf32> to vector<16x64xf32>
    %17 = tpu.concatenate %15, %16 in 1 : vector<16x64xf32>, vector<16x64xf32> -> vector<16x128xf32>
    %c0_9 = arith.constant 0 : index
    %c0_10 = arith.constant 0 : index
    %18 = vector.load %arg5[%c0_9, %c0_10] : memref<256x16xf32, #tpu.memory_space<vmem>>, vector<256x16xf32>
    %cst_11 = arith.constant dense<0.000000e+00> : vector<256x128xf32>
    %19 = tpu.matmul %18, %17, %cst_11 {dimension_numbers = #tpu.dot_dimension_numbers<[1], [0], [0], [1], [0, 0, 1, 1], [], []>} : vector<256x16xf32>, vector<16x128xf32>, vector<256x128xf32> -> vector<256x128xf32>
    %c0_12 = arith.constant 0 : index
    %c0_13 = arith.constant 0 : index
    %20 = vector.load %arg6[%c0_12, %c0_13] : memref<1x128xf32, #tpu.memory_space<vmem>>, vector<1x128xf32>
    %21 = vector.broadcast %20 : vector<1x128xf32> to vector<256x128xf32>
    %22 = arith.addf %19, %21 : vector<256x128xf32>
    %c0_14 = arith.constant 0 : index
    %c0_15 = arith.constant 0 : index
    %23 = vector.load %arg7[%c0_14, %c0_15] : memref<256x128xf32, #tpu.memory_space<vmem>>, vector<256x128xf32>
    tpu.vector_store %arg7[%c0_14, %c0_15], %22 {strides = array<i32>} : memref<256x128xf32, #tpu.memory_space<vmem>>, vector<256x128xf32>,
    return
  }
  func.func @transform_0(%arg0: i32) -> (i32, i32) {
    %c0_i32 = arith.constant 0 : i32
    %c0_i32_0 = arith.constant 0 : i32
    %c0_i32_1 = arith.constant 0 : i32
    return %c0_i32, %c0_i32_0 : i32, i32
  }
  func.func @transform_1(%arg0: i32) -> (i32, i32) {
    %c0_i32 = arith.constant 0 : i32
    %c0_i32_0 = arith.constant 0 : i32
    %c0_i32_1 = arith.constant 0 : i32
    return %c0_i32, %c0_i32_0 : i32, i32
  }
  func.func @transform_2(%arg0: i32) -> (i32, i32) {
    %c0_i32 = arith.constant 0 : i32
    %c0_i32_0 = arith.constant 0 : i32
    %c0_i32_1 = arith.constant 0 : i32
    return %c0_i32, %c0_i32_0 : i32, i32
  }
  func.func @transform_3(%arg0: i32) -> (i32, i32) {
    %c0_i32 = arith.constant 0 : i32
    %c0_i32_0 = arith.constant 0 : i32
    %c0_i32_1 = arith.constant 0 : i32
    return %c0_i32, %c0_i32_0 : i32, i32
  }
  func.func @transform_4(%arg0: i32) -> (i32, i32) {
    %c0_i32 = arith.constant 0 : i32
    %c0_i32_0 = arith.constant 0 : i32
    %c0_i32_1 = arith.constant 0 : i32
    return %c0_i32, %c0_i32_0 : i32, i32
  }
  func.func @transform_5(%arg0: i32) -> (i32, i32) {
    %c0_i32 = arith.constant 0 : i32
    %c0_i32_0 = arith.constant 0 : i32
    %c0_i32_1 = arith.constant 0 : i32
    return %c0_i32, %c0_i32_0 : i32, i32
  }
  func.func @transform_6(%arg0: i32) -> (i32, i32) {
    %c0_i32 = arith.constant 0 : i32
    %c0_i32_0 = arith.constant 0 : i32
    %c0_i32_1 = arith.constant 0 : i32
    return %c0_i32, %c0_i32_0 : i32, i32
  }
}

</mosaic_0001>

<bundles_post_ra>
// kernel: _lambda_.3
= control target key start
LH: loop header
LB: loop body
LE: loop exit
PB: predicated region body
PF: predicated region fallthrough
CT: control target
= control target key end

     0   :  { %vm109_vm0 = vcmask 1042432   ;;  %vm60_vm1 = vcmask 220160   ;;  %vm334_vm2 = vcmask 64512   ;;  %s767_s1 = inlined_call_operand.vmem [shape: f32[27,8], index: 1, kind: input, shape index: {}]   ;;  %s768_s3 = inlined_call_operand.vmem [shape: f32[27,8], index: 3, kind: input, shape index: {}]   ;;  %s769_s0 = inlined_call_operand.vmem [shape: f32[256,27], index: 0, kind: input, shape index: {}]   ;;  %s770_s2 = inlined_call_operand.vmem [shape: f32[1,8], index: 2, kind: input, shape index: {}]   ;;  %s771_s4 = inlined_call_operand.vmem [shape: f32[1,8], index: 4, kind: input, shape index: {}]   ;;  %s772_s5 = inlined_call_operand.vmem [shape: f32[256,8], index: 5, kind: output, shape index: {}]  }
   0x1   :  { %v55_v0 = vld [vmem:[%s767_s1 + $0x18] sm:$0x7]  ;;  %v54_v2 = vld [vmem:[%s767_s1 + $0x10] sm:$0xff]  ;;  %v53_v4 = vld [vmem:[%s767_s1 + $0x8] sm:$0xff] }
   0x2   :  { %v181_v1 = vld [vmem:[%s768_s3 + $0x18] sm:$0x7]  ;;  %405 = vmatpush.msk.msra.mxu2 %vm109_vm0, %v55_v0  ;;  %v180_v3 = vld [vmem:[%s768_s3 + $0x10] sm:$0xff]  ;;  %v179_v5 = vld [vmem:[%s768_s3 + $0x8] sm:$0xff]  ;;  %371 = vmatpush.msk.msra.mxu0 %vm109_vm0, %v55_v0 }
   0x3   :  { %409 = vmatpush.msk.msra.mxu3 %vm109_vm0, %v181_v1  ;;  %388 = vmatpush.msk.msra.mxu1 %vm109_vm0, %v181_v1  ;;  %v52_v6 = vld [vmem:[%s767_s1] sm:$0xff]  ;;  %v29_v12 = vld [vmem:[%s769_s0 + $0x48] sm:$0xff]  ;;  %v30_v16 = vld [vmem:[%s769_s0 + $0x50] sm:$0xff] }
   0x4   :  { %406 = vmatpush.msra.mxu2 %v54_v2  ;;  %v178_v7 = vld [vmem:[%s768_s3] sm:$0xff]  ;;  %126 = vmatpush.msra.mxu0 %v54_v2  ;;  %v45_v13 = vld [vmem:[%s769_s0 + $0xc8] sm:$0xff]  ;;  %v46_v17 = vld [vmem:[%s769_s0 + $0xd0] sm:$0xff] }
   0x5   :  { %410 = vmatpush.msra.mxu3 %v180_v3  ;;  %250 = vmatpush.msra.mxu1 %v180_v3  ;;  %v28_v8 = vld [vmem:[%s769_s0 + $0x40] sm:$0xff]  ;;  %v21_v14 = vld [vmem:[%s769_s0 + $0x8] sm:$0xff]  ;;  %v22_v18 = vld [vmem:[%s769_s0 + $0x10] sm:$0xff] }
   0x6   :  { %407 = vmatpush.msra.mxu2 %v53_v4  ;;  %v44_v9 = vld [vmem:[%s769_s0 + $0xc0] sm:$0xff]  ;;  %127 = vmatpush.msra.mxu0 %v53_v4  ;;  %v37_v15 = vld [vmem:[%s769_s0 + $0x88] sm:$0xff]  ;;  %v38_v19 = vld [vmem:[%s769_s0 + $0x90] sm:$0xff] }
   0x7   :  { %411 = vmatpush.msra.mxu3 %v179_v5  ;;  %251 = vmatpush.msra.mxu1 %v179_v5  ;;  %v20_v10 = vld [vmem:[%s769_s0] sm:$0xff]  ;;  %v31_v20 = vld [vmem:[%s769_s0 + $0x58] sm:$0xff]  ;;  %v33_v28 = vld [vmem:[%s769_s0 + $0x68] sm:$0xff] }
   0x8   :  { %408 = vmatpush.msra.mxu2 %v52_v6  ;;  %v36_v11 = vld [vmem:[%s769_s0 + $0x80] sm:$0xff]  ;;  %128 = vmatpush.msra.mxu0 %v52_v6  ;;  %v47_v21 = vld [vmem:[%s769_s0 + $0xd8] sm:$0xff]  ;;  %v49_v29 = vld [vmem:[%s769_s0 + $0xe8] sm:$0xff] }
   0x9   :  { %412 = vmatpush.msra.mxu3 %v178_v7  ;;  %380 = vmatmul.msk.f32.vlgmr.msra.gmra.mxu2 %vm60_vm1, %v28_v8  ;;  %v23_v22 = vld [vmem:[%s769_s0 + $0x18] sm:$0xff]  ;;  %v32_v24 = vld [vmem:[%s769_s0 + $0x60] sm:$0xff]  ;;  %v25_v30 = vld [vmem:[%s769_s0 + $0x28] sm:$0xff] }
   0xa   :  { %397 = vmatmul.msk.f32.vlgmr.msra.gmra.mxu3 %vm60_vm1, %v44_v9  ;;  %252 = vmatpush.msra.mxu1 %v178_v7  ;;  %v39_v23 = vld [vmem:[%s769_s0 + $0x98] sm:$0xff]  ;;  %v48_v25 = vld [vmem:[%s769_s0 + $0xe0] sm:$0xff]  ;;  %v41_v31 = vld [vmem:[%s769_s0 + $0xa8] sm:$0xff] }
   0xb   :  { %372 = vmatmul.msk.f32.vlgmr.msra.gmra.mxu0 %vm60_vm1, %v20_v10  ;;  %389 = vmatmul.msk.f32.vlgmr.msra.gmra.mxu1 %vm60_vm1, %v36_v11  ;;  %v24_v26 = vld [vmem:[%s769_s0 + $0x20] sm:$0xff]  ;;  %v34_v32 = vld [vmem:[%s769_s0 + $0x70] sm:$0xff]  ;;  %v35_v36 = vld [vmem:[%s769_s0 + $0x78] sm:$0xff] }
   0xc   :  { %v40_v27 = vld [vmem:[%s769_s0 + $0xa0] sm:$0xff]  ;;  %v50_v33 = vld [vmem:[%s769_s0 + $0xf0] sm:$0xff]  ;;  %v51_v37 = vld [vmem:[%s769_s0 + $0xf8] sm:$0xff] }
   0xd   :  { %v26_v34 = vld [vmem:[%s769_s0 + $0x30] sm:$0xff]  ;;  %v27_v38 = vld [vmem:[%s769_s0 + $0x38] sm:$0xff]  ;;  %v600_v40 = vld [vmem:[%s770_s2] ss:$0 sm:$0xff] }
   0xe   :  { %v42_v35 = vld [vmem:[%s769_s0 + $0xb0] sm:$0xff]  ;;  %v43_v39 = vld [vmem:[%s769_s0 + $0xb8] sm:$0xff]  ;;  %v605_v41 = vld [vmem:[%s771_s4] ss:$0 sm:$0xff] }
  0x11   :  { %381 = vmatmul.msk.f32.gmra.mxu2 %vm60_vm1, %v29_v12 }
  0x12   :  { %398 = vmatmul.msk.f32.gmra.mxu3 %vm60_vm1, %v45_v13 }
  0x13   :  { %373 = vmatmul.msk.f32.gmra.mxu0 %vm60_vm1, %v21_v14  ;;  %390 = vmatmul.msk.f32.gmra.mxu1 %vm60_vm1, %v37_v15 }
  0x19   :  { %382 = vmatmul.msk.f32.gmra.mxu2 %vm60_vm1, %v30_v16 }
  0x1a   :  { %399 = vmatmul.msk.f32.gmra.mxu3 %vm60_vm1, %v46_v17 }
  0x1b   :  { %374 = vmatmul.msk.f32.gmra.mxu0 %vm60_vm1, %v22_v18  ;;  %391 = vmatmul.msk.f32.gmra.mxu1 %vm60_vm1, %v38_v19 }
  0x21   :  { %383 = vmatmul.msk.f32.gmra.mxu2 %vm60_vm1, %v31_v20 }
  0x22   :  { %400 = vmatmul.msk.f32.gmra.mxu3 %vm60_vm1, %v47_v21 }
  0x23   :  { %375 = vmatmul.msk.f32.gmra.mxu0 %vm60_vm1, %v23_v22  ;;  %392 = vmatmul.msk.f32.gmra.mxu1 %vm60_vm1, %v39_v23 }
  0x29   :  { %384 = vmatmul.msk.f32.gmra.mxu2 %vm60_vm1, %v32_v24 }
  0x2a   :  { %401 = vmatmul.msk.f32.gmra.mxu3 %vm60_vm1, %v48_v25 }
  0x2b   :  { %376 = vmatmul.msk.f32.gmra.mxu0 %vm60_vm1, %v24_v26  ;;  %393 = vmatmul.msk.f32.gmra.mxu1 %vm60_vm1, %v40_v27 }
  0x31   :  { %385 = vmatmul.msk.f32.gmra.mxu2 %vm60_vm1, %v33_v28 }
  0x32   :  { %402 = vmatmul.msk.f32.gmra.mxu3 %vm60_vm1, %v49_v29 }
  0x33   :  { %377 = vmatmul.msk.f32.gmra.mxu0 %vm60_vm1, %v25_v30  ;;  %394 = vmatmul.msk.f32.gmra.mxu1 %vm60_vm1, %v41_v31 }
  0x39   :  { %386 = vmatmul.msk.f32.gmra.mxu2 %vm60_vm1, %v34_v32 }
  0x3a   :  { %403 = vmatmul.msk.f32.gmra.mxu3 %vm60_vm1, %v50_v33 }
  0x3b   :  { %378 = vmatmul.msk.f32.gmra.mxu0 %vm60_vm1, %v26_v34  ;;  %395 = vmatmul.msk.f32.gmra.mxu1 %vm60_vm1, %v42_v35 }
  0x41   :  { %387 = vmatmul.msk.f32.gmra.mxu2 %vm60_vm1, %v35_v36 }
  0x42   :  { %404 = vmatmul.msk.f32.gmra.mxu3 %vm60_vm1, %v51_v37 }
  0x43   :  { %379 = vmatmul.msk.f32.gmra.mxu0 %vm60_vm1, %v27_v38  ;;  %396 = vmatmul.msk.f32.gmra.mxu1 %vm60_vm1, %v43_v39 }
  0x88   :  { %v130_v42 = vpop.f32.mrf.mxu0  ;;  %v254_v43 = vpop.f32.mrf.mxu1 }
  0x89   :  { %v131_v44 = vadd.f32 %v600_v40, %v130_v42  ;;  %v255_v45 = vadd.f32 %v605_v41, %v254_v43 }
  0x8b   :  { %v302_v46 = vmax.f32 %v131_v44, 0.0  ;;  %v318_v47 = vmax.f32 %v255_v45, 0.0 }
  0x8c   :  { %v154_v48 = vpop.f32.mrf.mxu2 }
  0x8d   :  { %v278_v49 = vpop.f32.mrf.mxu3  ;;  %335 = vst.msk [vmem:[%s772_s5] sm:$0xff] %vm334_vm2, %v302_v46  ;;  %v155_v50 = vadd.f32 %v600_v40, %v154_v48 }
  0x8e   :  { %v279_v51 = vadd.f32 %v605_v41, %v278_v49  ;;  %351 = vst.msk [vmem:[%s772_s5 + $0x80] sm:$0xff] %vm334_vm2, %v318_v47 }
  0x8f   :  { %v310_v52 = vmax.f32 %v155_v50, 0.0 }
  0x90   :  { %v326_v53 = vmax.f32 %v279_v51, 0.0  ;;  %v133_v54 = vpop.f32.mrf.mxu0  ;;  %v257_v55 = vpop.f32.mrf.mxu1 }
  0x91   :  { %343 = vst.msk [vmem:[%s772_s5 + $0x40] sm:$0xff] %vm334_vm2, %v310_v52  ;;  %v134_v56 = vadd.f32 %v600_v40, %v133_v54  ;;  %v258_v57 = vadd.f32 %v605_v41, %v257_v55 }
  0x92   :  { %359 = vst.msk [vmem:[%s772_s5 + $0xc0] sm:$0xff] %vm334_vm2, %v326_v53 }
  0x93   :  { %v303_v58 = vmax.f32 %v134_v56, 0.0  ;;  %v319_v59 = vmax.f32 %v258_v57, 0.0 }
  0x94   :  { %v157_v60 = vpop.f32.mrf.mxu2 }
  0x95   :  { %v281_v61 = vpop.f32.mrf.mxu3  ;;  %336 = vst.msk [vmem:[%s772_s5 + $0x8] sm:$0xff] %vm334_vm2, %v303_v58  ;;  %v158_v62 = vadd.f32 %v600_v40, %v157_v60 }
  0x96   :  { %v282_v63 = vadd.f32 %v605_v41, %v281_v61  ;;  %352 = vst.msk [vmem:[%s772_s5 + $0x88] sm:$0xff] %vm334_vm2, %v319_v59 }
  0x97   :  { %v311_v0 = vmax.f32 %v158_v62, 0.0 }
  0x98   :  { %v327_v1 = vmax.f32 %v282_v63, 0.0  ;;  %v136_v2 = vpop.f32.mrf.mxu0  ;;  %v260_v3 = vpop.f32.mrf.mxu1 }
  0x99   :  { %344 = vst.msk [vmem:[%s772_s5 + $0x48] sm:$0xff] %vm334_vm2, %v311_v0  ;;  %v137_v4 = vadd.f32 %v600_v40, %v136_v2  ;;  %v261_v5 = vadd.f32 %v605_v41, %v260_v3 }
  0x9a   :  { %360 = vst.msk [vmem:[%s772_s5 + $0xc8] sm:$0xff] %vm334_vm2, %v327_v1 }
  0x9b   :  { %v304_v6 = vmax.f32 %v137_v4, 0.0  ;;  %v320_v7 = vmax.f32 %v261_v5, 0.0 }
  0x9c   :  { %v160_v8 = vpop.f32.mrf.mxu2 }
  0x9d   :  { %v284_v9 = vpop.f32.mrf.mxu3  ;;  %337 = vst.msk [vmem:[%s772_s5 + $0x10] sm:$0xff] %vm334_vm2, %v304_v6  ;;  %v161_v10 = vadd.f32 %v600_v40, %v160_v8 }
  0x9e   :  { %v285_v11 = vadd.f32 %v605_v41, %v284_v9  ;;  %353 = vst.msk [vmem:[%s772_s5 + $0x90] sm:$0xff] %vm334_vm2, %v320_v7 }
  0x9f   :  { %v312_v12 = vmax.f32 %v161_v10, 0.0 }
  0xa0   :  { %v328_v13 = vmax.f32 %v285_v11, 0.0  ;;  %v139_v14 = vpop.f32.mrf.mxu0  ;;  %v263_v15 = vpop.f32.mrf.mxu1 }
  0xa1   :  { %345 = vst.msk [vmem:[%s772_s5 + $0x50] sm:$0xff] %vm334_vm2, %v312_v12  ;;  %v140_v16 = vadd.f32 %v600_v40, %v139_v14  ;;  %v264_v17 = vadd.f32 %v605_v41, %v263_v15 }
  0xa2   :  { %361 = vst.msk [vmem:[%s772_s5 + $0xd0] sm:$0xff] %vm334_vm2, %v328_v13 }
  0xa3   :  { %v305_v18 = vmax.f32 %v140_v16, 0.0  ;;  %v321_v19 = vmax.f32 %v264_v17, 0.0 }
  0xa4   :  { %v163_v20 = vpop.f32.mrf.mxu2 }
  0xa5   :  { %v287_v21 = vpop.f32.mrf.mxu3  ;;  %338 = vst.msk [vmem:[%s772_s5 + $0x18] sm:$0xff] %vm334_vm2, %v305_v18  ;;  %v164_v22 = vadd.f32 %v600_v40, %v163_v20 }
  0xa6   :  { %v288_v23 = vadd.f32 %v605_v41, %v287_v21  ;;  %354 = vst.msk [vmem:[%s772_s5 + $0x98] sm:$0xff] %vm334_vm2, %v321_v19 }
  0xa7   :  { %v313_v24 = vmax.f32 %v164_v22, 0.0 }
  0xa8   :  { %v329_v25 = vmax.f32 %v288_v23, 0.0  ;;  %v142_v26 = vpop.f32.mrf.mxu0  ;;  %v266_v27 = vpop.f32.mrf.mxu1 }
  0xa9   :  { %346 = vst.msk [vmem:[%s772_s5 + $0x58] sm:$0xff] %vm334_vm2, %v313_v24  ;;  %v143_v28 = vadd.f32 %v600_v40, %v142_v26  ;;  %v267_v29 = vadd.f32 %v605_v41, %v266_v27 }
  0xaa   :  { %362 = vst.msk [vmem:[%s772_s5 + $0xd8] sm:$0xff] %vm334_vm2, %v329_v25 }
  0xab   :  { %v306_v30 = vmax.f32 %v143_v28, 0.0  ;;  %v322_v31 = vmax.f32 %v267_v29, 0.0 }
  0xac   :  { %v166_v32 = vpop.f32.mrf.mxu2 }
  0xad   :  { %v290_v33 = vpop.f32.mrf.mxu3  ;;  %339 = vst.msk [vmem:[%s772_s5 + $0x20] sm:$0xff] %vm334_vm2, %v306_v30  ;;  %v167_v34 = vadd.f32 %v600_v40, %v166_v32 }
  0xae   :  { %v291_v35 = vadd.f32 %v605_v41, %v290_v33  ;;  %355 = vst.msk [vmem:[%s772_s5 + $0xa0] sm:$0xff] %vm334_vm2, %v322_v31 }
  0xaf   :  { %v314_v36 = vmax.f32 %v167_v34, 0.0 }
  0xb0   :  { %v330_v37 = vmax.f32 %v291_v35, 0.0  ;;  %v145_v38 = vpop.f32.mrf.mxu0  ;;  %v269_v39 = vpop.f32.mrf.mxu1 }
  0xb1   :  { %347 = vst.msk [vmem:[%s772_s5 + $0x60] sm:$0xff] %vm334_vm2, %v314_v36  ;;  %v146_v42 = vadd.f32 %v600_v40, %v145_v38  ;;  %v270_v43 = vadd.f32 %v605_v41, %v269_v39 }
  0xb2   :  { %363 = vst.msk [vmem:[%s772_s5 + $0xe0] sm:$0xff] %vm334_vm2, %v330_v37 }
  0xb3   :  { %v307_v44 = vmax.f32 %v146_v42, 0.0  ;;  %v323_v45 = vmax.f32 %v270_v43, 0.0 }
  0xb4   :  { %v169_v46 = vpop.f32.mrf.mxu2 }
  0xb5   :  { %v293_v47 = vpop.f32.mrf.mxu3  ;;  %340 = vst.msk [vmem:[%s772_s5 + $0x28] sm:$0xff] %vm334_vm2, %v307_v44  ;;  %v170_v48 = vadd.f32 %v600_v40, %v169_v46 }
  0xb6   :  { %v294_v49 = vadd.f32 %v605_v41, %v293_v47  ;;  %356 = vst.msk [vmem:[%s772_s5 + $0xa8] sm:$0xff] %vm334_vm2, %v323_v45 }
  0xb7   :  { %v315_v50 = vmax.f32 %v170_v48, 0.0 }
  0xb8   :  { %v331_v51 = vmax.f32 %v294_v49, 0.0  ;;  %v148_v52 = vpop.f32.mrf.mxu0  ;;  %v272_v53 = vpop.f32.mrf.mxu1 }
  0xb9   :  { %348 = vst.msk [vmem:[%s772_s5 + $0x68] sm:$0xff] %vm334_vm2, %v315_v50  ;;  %v149_v54 = vadd.f32 %v600_v40, %v148_v52  ;;  %v273_v55 = vadd.f32 %v605_v41, %v272_v53 }
  0xba   :  { %364 = vst.msk [vmem:[%s772_s5 + $0xe8] sm:$0xff] %vm334_vm2, %v331_v51 }
  0xbb   :  { %v308_v56 = vmax.f32 %v149_v54, 0.0  ;;  %v324_v57 = vmax.f32 %v273_v55, 0.0 }
  0xbc   :  { %v172_v58 = vpop.f32.mrf.mxu2 }
  0xbd   :  { %v296_v59 = vpop.f32.mrf.mxu3  ;;  %341 = vst.msk [vmem:[%s772_s5 + $0x30] sm:$0xff] %vm334_vm2, %v308_v56  ;;  %v173_v60 = vadd.f32 %v600_v40, %v172_v58 }
  0xbe   :  { %v297_v61 = vadd.f32 %v605_v41, %v296_v59  ;;  %357 = vst.msk [vmem:[%s772_s5 + $0xb0] sm:$0xff] %vm334_vm2, %v324_v57 }
  0xbf   :  { %v316_v62 = vmax.f32 %v173_v60, 0.0 }
  0xc0   :  { %v332_v63 = vmax.f32 %v297_v61, 0.0  ;;  %v151_v0 = vpop.f32.mrf.mxu0  ;;  %v275_v1 = vpop.f32.mrf.mxu1 }
  0xc1   :  { %349 = vst.msk [vmem:[%s772_s5 + $0x70] sm:$0xff] %vm334_vm2, %v316_v62  ;;  %v152_v2 = vadd.f32 %v600_v40, %v151_v0  ;;  %v276_v3 = vadd.f32 %v605_v41, %v275_v1 }
  0xc2   :  { %365 = vst.msk [vmem:[%s772_s5 + $0xf0] sm:$0xff] %vm334_vm2, %v332_v63 }
  0xc3   :  { %v309_v4 = vmax.f32 %v152_v2, 0.0  ;;  %v325_v5 = vmax.f32 %v276_v3, 0.0 }
  0xc4   :  { %v175_v6 = vpop.f32.mrf.mxu2 }
  0xc5   :  { %v299_v7 = vpop.f32.mrf.mxu3  ;;  %342 = vst.msk [vmem:[%s772_s5 + $0x38] sm:$0xff] %vm334_vm2, %v309_v4  ;;  %v176_v8 = vadd.f32 %v600_v40, %v175_v6 }
  0xc6   :  { %v300_v9 = vadd.f32 %v605_v41, %v299_v7  ;;  %358 = vst.msk [vmem:[%s772_s5 + $0xb8] sm:$0xff] %vm334_vm2, %v325_v5 }
  0xc7   :  { %v317_v10 = vmax.f32 %v176_v8, 0.0 }
  0xc8   :  { %v333_v11 = vmax.f32 %v300_v9, 0.0 }
  0xc9   :  { %350 = vst.msk [vmem:[%s772_s5 + $0x78] sm:$0xff] %vm334_vm2, %v317_v10 }
  0xca   :  { %366 = vst.msk [vmem:[%s772_s5 + $0xf8] sm:$0xff] %vm334_vm2, %v333_v11 }

// kernel: _lambda_.4
= control target key start
LH: loop header
LB: loop body
LE: loop exit
PB: predicated region body
PF: predicated region fallthrough
CT: control target
= control target key end

     0   :  { %vm41_vm0 = vcmask 588800   ;;  %vm145_vm1 = vcmask 130048   ;;  %s340_s1 = inlined_call_operand.vmem [shape: f32[72,16], index: 1, kind: input, shape index: {}]   ;;  %s341_s3 = inlined_call_operand.vmem [shape: f32[72,16], index: 3, kind: input, shape index: {}]   ;;  %s342_s2 = inlined_call_operand.vmem [shape: f32[1,16], index: 2, kind: input, shape index: {}]   ;;  %s343_s0 = inlined_call_operand.vmem [shape: f32[64,72], index: 0, kind: input, shape index: {}]   ;;  %s344_s4 = inlined_call_operand.vmem [shape: f32[1,16], index: 4, kind: input, shape index: {}]   ;;  %s345_s5 = inlined_call_operand.vmem [shape: f32[64,16], index: 5, kind: output, shape index: {}]  }
   0x1   :  { %v36_v0 = vld [vmem:[%s340_s1 + $0x40] sm:$0xff]  ;;  %v35_v2 = vld [vmem:[%s340_s1 + $0x38] sm:$0xff]  ;;  %v34_v4 = vld [vmem:[%s340_s1 + $0x30] sm:$0xff] }
   0x2   :  { %v91_v1 = vld [vmem:[%s341_s3 + $0x40] sm:$0xff]  ;;  %166 = vmatpush.msra.mxu2 %v36_v0  ;;  %v90_v3 = vld [vmem:[%s341_s3 + $0x38] sm:$0xff]  ;;  %v89_v5 = vld [vmem:[%s341_s3 + $0x30] sm:$0xff]  ;;  %61 = vmatpush.msra.mxu0 %v36_v0 }
   0x3   :  { %175 = vmatpush.msra.mxu3 %v91_v1  ;;  %115 = vmatpush.msra.mxu1 %v91_v1  ;;  %v33_v6 = vld [vmem:[%s340_s1 + $0x28] sm:$0xff]  ;;  %v32_v8 = vld [vmem:[%s340_s1 + $0x20] sm:$0xff]  ;;  %v31_v10 = vld [vmem:[%s340_s1 + $0x18] sm:$0xff] }
   0x4   :  { %167 = vmatpush.msra.mxu2 %v35_v2  ;;  %v88_v7 = vld [vmem:[%s341_s3 + $0x28] sm:$0xff]  ;;  %62 = vmatpush.msra.mxu0 %v35_v2  ;;  %v87_v9 = vld [vmem:[%s341_s3 + $0x20] sm:$0xff]  ;;  %v86_v11 = vld [vmem:[%s341_s3 + $0x18] sm:$0xff] }
   0x5   :  { %176 = vmatpush.msra.mxu3 %v90_v3  ;;  %116 = vmatpush.msra.mxu1 %v90_v3  ;;  %v30_v12 = vld [vmem:[%s340_s1 + $0x10] sm:$0xff]  ;;  %v29_v14 = vld [vmem:[%s340_s1 + $0x8] sm:$0xff]  ;;  %v28_v16 = vld [vmem:[%s340_s1] sm:$0xff] }
   0x6   :  { %168 = vmatpush.msra.mxu2 %v34_v4  ;;  %63 = vmatpush.msra.mxu0 %v34_v4  ;;  %v85_v13 = vld [vmem:[%s341_s3 + $0x10] sm:$0xff]  ;;  %v84_v15 = vld [vmem:[%s341_s3 + $0x8] sm:$0xff]  ;;  %v83_v17 = vld [vmem:[%s341_s3] sm:$0xff] }
   0x7   :  { %177 = vmatpush.msra.mxu3 %v89_v5  ;;  %117 = vmatpush.msra.mxu1 %v89_v5  ;;  %v22_v18 = vld [vmem:[%s343_s0 + $0x10] sm:$0xff]  ;;  %v20_v20 = vld [vmem:[%s343_s0] sm:$0xff]  ;;  %v23_v22 = vld [vmem:[%s343_s0 + $0x18] sm:$0xff] }
   0x8   :  { %169 = vmatpush.msra.mxu2 %v33_v6  ;;  %64 = vmatpush.msra.mxu0 %v33_v6  ;;  %v26_v19 = vld [vmem:[%s343_s0 + $0x30] sm:$0xff]  ;;  %v24_v21 = vld [vmem:[%s343_s0 + $0x20] sm:$0xff]  ;;  %v27_v23 = vld [vmem:[%s343_s0 + $0x38] sm:$0xff] }
   0x9   :  { %178 = vmatpush.msra.mxu3 %v88_v7  ;;  %118 = vmatpush.msra.mxu1 %v88_v7  ;;  %v21_v24 = vld [vmem:[%s343_s0 + $0x8] sm:$0xff]  ;;  %v184_v26 = vld [vmem:[%s342_s2] ss:$0 sm:$0xff] }
   0xa   :  { %170 = vmatpush.msra.mxu2 %v32_v8  ;;  %65 = vmatpush.msra.mxu0 %v32_v8  ;;  %v25_v25 = vld [vmem:[%s343_s0 + $0x28] sm:$0xff]  ;;  %v185_v27 = vld [vmem:[%s344_s4] ss:$0 sm:$0xff] }
   0xb   :  { %179 = vmatpush.msra.mxu3 %v87_v9  ;;  %119 = vmatpush.msra.mxu1 %v87_v9 }
   0xc   :  { %171 = vmatpush.msra.mxu2 %v31_v10  ;;  %66 = vmatpush.msra.mxu0 %v31_v10 }
   0xd   :  { %180 = vmatpush.msra.mxu3 %v86_v11  ;;  %120 = vmatpush.msra.mxu1 %v86_v11 }
   0xe   :  { %172 = vmatpush.msra.mxu2 %v30_v12  ;;  %67 = vmatpush.msra.mxu0 %v30_v12 }
   0xf   :  { %181 = vmatpush.msra.mxu3 %v85_v13  ;;  %121 = vmatpush.msra.mxu1 %v85_v13 }
  0x10   :  { %173 = vmatpush.msra.mxu2 %v29_v14  ;;  %68 = vmatpush.msra.mxu0 %v29_v14 }
  0x11   :  { %182 = vmatpush.msra.mxu3 %v84_v15  ;;  %122 = vmatpush.msra.mxu1 %v84_v15 }
  0x12   :  { %174 = vmatpush.msra.mxu2 %v28_v16  ;;  %69 = vmatpush.msra.mxu0 %v28_v16 }
  0x13   :  { %183 = vmatpush.msra.mxu3 %v83_v17  ;;  %160 = vmatmul.msk.f32.vlgmr.msra.gmra.mxu2 %vm41_vm0, %v22_v18 }
  0x14   :  { %164 = vmatmul.msk.f32.vlgmr.msra.gmra.mxu3 %vm41_vm0, %v26_v19  ;;  %123 = vmatpush.msra.mxu1 %v83_v17 }
  0x15   :  { %158 = vmatmul.msk.f32.vlgmr.msra.gmra.mxu0 %vm41_vm0, %v20_v20  ;;  %162 = vmatmul.msk.f32.vlgmr.msra.gmra.mxu1 %vm41_vm0, %v24_v21 }
  0x1b   :  { %161 = vmatmul.msk.f32.gmra.mxu2 %vm41_vm0, %v23_v22 }
  0x1c   :  { %165 = vmatmul.msk.f32.gmra.mxu3 %vm41_vm0, %v27_v23 }
  0x1d   :  { %159 = vmatmul.msk.f32.gmra.mxu0 %vm41_vm0, %v21_v24  ;;  %163 = vmatmul.msk.f32.gmra.mxu1 %vm41_vm0, %v25_v25 }
  0x92   :  { %v71_v28 = vpop.f32.mrf.mxu0  ;;  %v125_v29 = vpop.f32.mrf.mxu1 }
  0x93   :  { %v72_v30 = vadd.f32 %v184_v26, %v71_v28  ;;  %v126_v31 = vadd.f32 %v185_v27, %v125_v29 }
  0x95   :  { %v137_v32 = vmax.f32 %v72_v30, 0.0  ;;  %v141_v33 = vmax.f32 %v126_v31, 0.0 }
  0x96   :  { %v77_v34 = vpop.f32.mrf.mxu2 }
  0x97   :  { %v131_v35 = vpop.f32.mrf.mxu3  ;;  %146 = vst.msk [vmem:[%s345_s5] sm:$0xff] %vm145_vm1, %v137_v32  ;;  %v78_v36 = vadd.f32 %v184_v26, %v77_v34 }
  0x98   :  { %v132_v37 = vadd.f32 %v185_v27, %v131_v35  ;;  %150 = vst.msk [vmem:[%s345_s5 + $0x20] sm:$0xff] %vm145_vm1, %v141_v33 }
  0x99   :  { %v139_v38 = vmax.f32 %v78_v36, 0.0 }
  0x9a   :  { %v143_v39 = vmax.f32 %v132_v37, 0.0  ;;  %v74_v40 = vpop.f32.mrf.mxu0  ;;  %v128_v41 = vpop.f32.mrf.mxu1 }
  0x9b   :  { %148 = vst.msk [vmem:[%s345_s5 + $0x10] sm:$0xff] %vm145_vm1, %v139_v38  ;;  %v75_v42 = vadd.f32 %v184_v26, %v74_v40  ;;  %v129_v43 = vadd.f32 %v185_v27, %v128_v41 }
  0x9c   :  { %152 = vst.msk [vmem:[%s345_s5 + $0x30] sm:$0xff] %vm145_vm1, %v143_v39 }
  0x9d   :  { %v138_v44 = vmax.f32 %v75_v42, 0.0  ;;  %v142_v45 = vmax.f32 %v129_v43, 0.0 }
  0x9e   :  { %v80_v46 = vpop.f32.mrf.mxu2 }
  0x9f   :  { %v134_v47 = vpop.f32.mrf.mxu3  ;;  %147 = vst.msk [vmem:[%s345_s5 + $0x8] sm:$0xff] %vm145_vm1, %v138_v44  ;;  %v81_v48 = vadd.f32 %v184_v26, %v80_v46 }
  0xa0   :  { %v135_v49 = vadd.f32 %v185_v27, %v134_v47  ;;  %151 = vst.msk [vmem:[%s345_s5 + $0x28] sm:$0xff] %vm145_vm1, %v142_v45 }
  0xa1   :  { %v140_v50 = vmax.f32 %v81_v48, 0.0 }
  0xa2   :  { %v144_v51 = vmax.f32 %v135_v49, 0.0 }
  0xa3   :  { %149 = vst.msk [vmem:[%s345_s5 + $0x18] sm:$0xff] %vm145_vm1, %v140_v50 }
  0xa4   :  { %153 = vst.msk [vmem:[%s345_s5 + $0x38] sm:$0xff] %vm145_vm1, %v144_v51 }

// kernel: _lambda_.5
= control target key start
LH: loop header
LB: loop body
LE: loop exit
PB: predicated region body
PF: predicated region fallthrough
CT: control target
= control target key end

     0   :  { %s502_s19 = smov 16   ;;  %vm55_vm0 = vcmask 130048   ;;  %vm68_vm1 = vcmask 261120   ;;  %vm165_vm2 = vcmask 523264   ;;  %s853_s0 = inlined_call_operand.vmem [shape: f32[64,16], index: 0, kind: input, shape index: {}]   ;;  %s854_s1 = inlined_call_operand.vmem [shape: f32[32,16], index: 1, kind: input, shape index: {}]   ;;  %s855_s2 = inlined_call_operand.vmem [shape: f32[1,16], index: 2, kind: input, shape index: {}]   ;;  %s856_s3 = inlined_call_operand.vmem [shape: f32[16,64], index: 3, kind: input, shape index: {}]   ;;  %s857_s5 = inlined_call_operand.vmem [shape: f32[1,128], index: 5, kind: input, shape index: {}]   ;;  %s858_s4 = inlined_call_operand.vmem [shape: f32[256,16], index: 4, kind: input, shape index: {}]   ;;  %s859_s6 = inlined_call_operand.vmem [shape: f32[256,128], index: 6, kind: output, shape index: {}]  }
   0x1   :  { %v23_v0 = vld [vmem:[%s853_s0] sm:$0xff]  ;;  %v25_v3 = vld [vmem:[%s853_s0 + $0x10] sm:$0xff]  ;;  %v24_v5 = vld [vmem:[%s853_s0 + $0x8] sm:$0xff] }
   0x2   :  { %v27_v1 = vld [vmem:[%s853_s0 + $0x20] sm:$0xff]  ;;  %v29_v4 = vld [vmem:[%s853_s0 + $0x30] sm:$0xff]  ;;  %v28_v6 = vld [vmem:[%s853_s0 + $0x28] sm:$0xff] }
   0x3   :  { %v31_v2 = vsub.f32 %v23_v0, %v27_v1  ;;  %v33_v7 = vsub.f32 %v25_v3, %v29_v4  ;;  %v63_v8 = vld [vmem:[%s854_s1 + $0x18] sm:$0xff]  ;;  %v62_v12 = vld [vmem:[%s854_s1 + $0x10] sm:$0xff]  ;;  %v61_v14 = vld [vmem:[%s854_s1 + $0x8] sm:$0xff]  ;;  %v32_v15 = vsub.f32 %v24_v5, %v28_v6 }
   0x4   :  { %v26_v10 = vld [vmem:[%s853_s0 + $0x18] sm:$0xff]  ;;  %93 = vmatpush.msra.mxu0 %v63_v8  ;;  %v60_v19 = vld [vmem:[%s854_s1] sm:$0xff]  ;;  %v115_v20 = vld [vmem:[%s856_s3 + $0x8] sm:$0xff] }
   0x5   :  { %v35_v9 = vand.u32 2147483647, %v31_v2  ;;  %v30_v11 = vld [vmem:[%s853_s0 + $0x38] sm:$0xff]  ;;  %v37_v13 = vand.u32 2147483647, %v33_v7  ;;  %v114_v21 = vld [vmem:[%s856_s3] sm:$0xff] }
   0x6   :  { %94 = vmatpush.msra.mxu0 %v62_v12  ;;  %v34_v16 = vsub.f32 %v26_v10, %v30_v11  ;;  %v36_v17 = vand.u32 2147483647, %v32_v15  ;;  %v500_v30 = vld [vmem:[%s855_s2] ss:$0 sm:$0xff]  ;;  %s503_s2 = smov 64   ;;  %v178_v52 = vld [vmem:[%s858_s4 + $0x50] sm:$0xff] }
   0x7   :  { %43 = vrot.lane.b32.xlu0 %v35_v9, %s502_s19  ;;  %47 = vrot.lane.b32.xlu1 %v37_v13, %s502_s19  ;;  %v189_v54 = vld [vmem:[%s858_s4 + $0xa8] sm:$0xff]  ;;  %v168_v55 = vld [vmem:[%s858_s4] sm:$0xff] }
   0x8   :  { %95 = vmatpush.msra.mxu0 %v61_v14  ;;  %v38_v18 = vand.u32 2147483647, %v34_v16  ;;  %v179_v56 = vld [vmem:[%s858_s4 + $0x58] sm:$0xff]  ;;  %v190_v57 = vld [vmem:[%s858_s4 + $0xb0] sm:$0xff]  ;;  %v169_v58 = vld [vmem:[%s858_s4 + $0x8] sm:$0xff] }
   0x9   :  { %v180_v59 = vld [vmem:[%s858_s4 + $0x60] sm:$0xff]  ;;  %v191_v60 = vld [vmem:[%s858_s4 + $0xb8] sm:$0xff]  ;;  %v170_v61 = vld [vmem:[%s858_s4 + $0x10] sm:$0xff] }
   0xa   :  { %96 = vmatpush.msra.mxu0 %v60_v19  ;;  %v181_v62 = vld [vmem:[%s858_s4 + $0x68] sm:$0xff]  ;;  %v192_v63 = vld [vmem:[%s858_s4 + $0xc0] sm:$0xff]  ;;  %v182_v1 = vld [vmem:[%s858_s4 + $0x70] sm:$0xff] }
   0xb   :  { %v193_v2 = vld [vmem:[%s858_s4 + $0xc8] sm:$0xff]  ;;  %v183_v4 = vld [vmem:[%s858_s4 + $0x78] sm:$0xff]  ;;  %v184_v7 = vld [vmem:[%s858_s4 + $0x80] sm:$0xff] }
   0xc   :  { %142 = vmatpush.msrb.mxu0 %v115_v20  ;;  %v173_v6 = vld [vmem:[%s858_s4 + $0x28] sm:$0xff]  ;;  %v195_v8 = vld [vmem:[%s858_s4 + $0xd8] sm:$0xff]  ;;  %v174_v9 = vld [vmem:[%s858_s4 + $0x30] sm:$0xff] }
   0xd   :  { %v196_v11 = vld [vmem:[%s858_s4 + $0xe0] sm:$0xff]  ;;  %v175_v12 = vld [vmem:[%s858_s4 + $0x38] sm:$0xff]  ;;  %v186_v13 = vld [vmem:[%s858_s4 + $0x90] sm:$0xff] }
   0xe   :  { %143 = vmatpush.msrb.mxu0 %v114_v21  ;;  %v197_v14 = vld [vmem:[%s858_s4 + $0xe8] sm:$0xff]  ;;  %v176_v15 = vld [vmem:[%s858_s4 + $0x40] sm:$0xff]  ;;  %v187_v16 = vld [vmem:[%s858_s4 + $0x98] sm:$0xff] }
   0xf   :  { %45 = vrot.lane.b32.xlu0 %v36_v17, %s502_s19  ;;  %49 = vrot.lane.b32.xlu1 %v38_v18, %s502_s19  ;;  %v198_v17 = vld [vmem:[%s858_s4 + $0xf0] sm:$0xff]  ;;  %v177_v18 = vld [vmem:[%s858_s4 + $0x48] sm:$0xff] }
  0x10   :  { %v188_v19 = vld [vmem:[%s858_s4 + $0xa0] sm:$0xff]  ;;  %v199_v20 = vld [vmem:[%s858_s4 + $0xf8] sm:$0xff] }
  0x11   :  { %v723_v21 = vld [vmem:[%s857_s5] ss:$0 sm:$0xff] }
  0x79   :  { %v44_v22 = vpop.permute.xlu0 %43  ;;  %v48_v26 = vpop.permute.xlu1 %47 }
  0x7a   :  { %v56_v23 = vsel %vm55_vm0, %v23_v0, %v44_v22  ;;  %v58_v27 = vsel %vm55_vm0, %v25_v3, %v48_v26  ;;  %v171_v0 = vld [vmem:[%s858_s4 + $0x18] sm:$0xff]  ;;  %v172_v3 = vld [vmem:[%s858_s4 + $0x20] sm:$0xff] }
  0x7b   :  { %449 = vmatmul.msk.f32.vlgmr.msra.gmra.mxu0 %vm68_vm1, %v56_v23 }
  0x81   :  { %v46_v24 = vpop.permute.xlu0 %45  ;;  %v50_v28 = vpop.permute.xlu1 %49 }
  0x82   :  { %v57_v25 = vsel %vm55_vm0, %v24_v5, %v46_v24  ;;  %v59_v29 = vsel %vm55_vm0, %v26_v10, %v50_v28  ;;  %v194_v5 = vld [vmem:[%s858_s4 + $0xd0] sm:$0xff]  ;;  %v185_v10 = vld [vmem:[%s858_s4 + $0x88] sm:$0xff] }
  0x83   :  { %450 = vmatmul.msk.f32.gmra.mxu0 %vm68_vm1, %v57_v25 }
  0x8b   :  { %451 = vmatmul.msk.f32.gmra.mxu0 %vm68_vm1, %v58_v27 }
  0x93   :  { %452 = vmatmul.msk.f32.gmra.mxu0 %vm68_vm1, %v59_v29 }
  0xf8   :  { %v98_v31 = vpop.f32.mrf.mxu0 }
  0xf9   :  { %v99_v32 = vadd.f32 %v500_v30, %v98_v31 }
  0xfb   :  { %v110_v33 = vmax.f32 %v99_v32, 0.0 }
  0xfd   :  { %453 = vmatmul.msk.f32.vlgmr.msrb.gmra.mxu0 %vm55_vm0, %v110_v33 }
 0x100   :  { %v101_v34 = vpop.f32.mrf.mxu0 }
 0x101   :  { %v102_v35 = vadd.f32 %v500_v30, %v101_v34 }
 0x103   :  { %v111_v36 = vmax.f32 %v102_v35, 0.0 }
 0x105   :  { %454 = vmatmul.msk.f32.gmra.mxu0 %vm55_vm0, %v111_v36 }
 0x108   :  { %v104_v37 = vpop.f32.mrf.mxu0 }
 0x109   :  { %v105_v38 = vadd.f32 %v500_v30, %v104_v37 }
 0x10b   :  { %v112_v39 = vmax.f32 %v105_v38, 0.0 }
 0x10d   :  { %455 = vmatmul.msk.f32.gmra.mxu0 %vm55_vm0, %v112_v39 }
 0x110   :  { %v107_v40 = vpop.f32.mrf.mxu0 }
 0x111   :  { %v108_v41 = vadd.f32 %v500_v30, %v107_v40 }
 0x113   :  { %v113_v42 = vmax.f32 %v108_v41, 0.0 }
 0x115   :  { %456 = vmatmul.msk.f32.gmra.mxu0 %vm55_vm0, %v113_v42 }
 0x17a   :  { %v145_v43 = vpop.f32.mrf.mxu0 }
 0x182   :  { %v148_v44 = vpop.f32.mrf.mxu0 }
 0x18a   :  { %v151_v45 = vpop.f32.mrf.mxu0 }
 0x192   :  { %v154_v46 = vpop.f32.mrf.mxu0 }
 0x193   :  { %v495_v47 = vpack.i.bf16 %v151_v45, %v154_v46 }
 0x195   :  { %496 = vrot.lane.b32.xlu2 %v495_v47, %s503_s2 }
 0x1ef   :  { %v497_v48 = vpop.permute.xlu2 %496 }
 0x1f0   :  { %v499_v49 = vunpack.i.h.bf16 %v497_v48  ;;  %v498_v50 = vunpack.i.l.bf16 %v497_v48 }
 0x1f2   :  { %v167_v51 = vsel %vm165_vm2, %v148_v44, %v498_v50  ;;  %v166_v53 = vsel %vm165_vm2, %v145_v43, %v499_v49 }
 0x1f3   :  { %314 = vmatpush.msra.mxu1 %v167_v51  ;;  %489 = vmatpush.msra.mxu2 %v167_v51 }
 0x1f4   :  { %490 = vmatpush.msra.mxu3 %v167_v51 }
 0x1f5   :  { %315 = vmatpush.msra.mxu1 %v166_v53  ;;  %491 = vmatpush.msra.mxu2 %v166_v53 }
 0x1f6   :  { %492 = vmatpush.msra.mxu3 %v166_v53  ;;  %467 = vmatmul.msk.f32.vlgmr.msra.gmra.mxu2 %vm55_vm0, %v178_v52 }
 0x1f7   :  { %478 = vmatmul.msk.f32.vlgmr.msra.gmra.mxu3 %vm55_vm0, %v189_v54  ;;  %457 = vmatmul.msk.f32.vlgmr.msra.gmra.mxu1 %vm55_vm0, %v168_v55 }
 0x1fe   :  { %468 = vmatmul.msk.f32.gmra.mxu2 %vm55_vm0, %v179_v56 }
 0x1ff   :  { %479 = vmatmul.msk.f32.gmra.mxu3 %vm55_vm0, %v190_v57  ;;  %458 = vmatmul.msk.f32.gmra.mxu1 %vm55_vm0, %v169_v58 }
 0x206   :  { %469 = vmatmul.msk.f32.gmra.mxu2 %vm55_vm0, %v180_v59 }
 0x207   :  { %480 = vmatmul.msk.f32.gmra.mxu3 %vm55_vm0, %v191_v60  ;;  %459 = vmatmul.msk.f32.gmra.mxu1 %vm55_vm0, %v170_v61 }
 0x20e   :  { %470 = vmatmul.msk.f32.gmra.mxu2 %vm55_vm0, %v181_v62 }
 0x20f   :  { %481 = vmatmul.msk.f32.gmra.mxu3 %vm55_vm0, %v192_v63  ;;  %460 = vmatmul.msk.f32.gmra.mxu1 %vm55_vm0, %v171_v0 }
 0x216   :  { %471 = vmatmul.msk.f32.gmra.mxu2 %vm55_vm0, %v182_v1 }
 0x217   :  { %482 = vmatmul.msk.f32.gmra.mxu3 %vm55_vm0, %v193_v2  ;;  %461 = vmatmul.msk.f32.gmra.mxu1 %vm55_vm0, %v172_v3 }
 0x21e   :  { %472 = vmatmul.msk.f32.gmra.mxu2 %vm55_vm0, %v183_v4 }
 0x21f   :  { %483 = vmatmul.msk.f32.gmra.mxu3 %vm55_vm0, %v194_v5  ;;  %462 = vmatmul.msk.f32.gmra.mxu1 %vm55_vm0, %v173_v6 }
 0x226   :  { %473 = vmatmul.msk.f32.gmra.mxu2 %vm55_vm0, %v184_v7 }
 0x227   :  { %484 = vmatmul.msk.f32.gmra.mxu3 %vm55_vm0, %v195_v8  ;;  %463 = vmatmul.msk.f32.gmra.mxu1 %vm55_vm0, %v174_v9 }
 0x22e   :  { %474 = vmatmul.msk.f32.gmra.mxu2 %vm55_vm0, %v185_v10 }
 0x22f   :  { %485 = vmatmul.msk.f32.gmra.mxu3 %vm55_vm0, %v196_v11  ;;  %464 = vmatmul.msk.f32.gmra.mxu1 %vm55_vm0, %v175_v12 }
 0x236   :  { %475 = vmatmul.msk.f32.gmra.mxu2 %vm55_vm0, %v186_v13 }
 0x237   :  { %486 = vmatmul.msk.f32.gmra.mxu3 %vm55_vm0, %v197_v14  ;;  %465 = vmatmul.msk.f32.gmra.mxu1 %vm55_vm0, %v176_v15 }
 0x23e   :  { %476 = vmatmul.msk.f32.gmra.mxu2 %vm55_vm0, %v187_v16 }
 0x23f   :  { %487 = vmatmul.msk.f32.gmra.mxu3 %vm55_vm0, %v198_v17  ;;  %466 = vmatmul.msk.f32.gmra.mxu1 %vm55_vm0, %v177_v18 }
 0x246   :  { %477 = vmatmul.msk.f32.gmra.mxu2 %vm55_vm0, %v188_v19 }
 0x247   :  { %488 = vmatmul.msk.f32.gmra.mxu3 %vm55_vm0, %v199_v20 }
 0x274   :  { %v317_v22 = vpop.f32.mrf.mxu1 }
 0x275   :  { %v318_v23 = vadd.f32 %v723_v21, %v317_v22 }
 0x277   :  { %413 = vst [vmem:[%s859_s6] sm:$0xff] %v318_v23 }
 0x279   :  { %v347_v24 = vpop.f32.mrf.mxu2 }
 0x27a   :  { %v348_v25 = vadd.f32 %v723_v21, %v347_v24  ;;  %v380_v26 = vpop.f32.mrf.mxu3 }
 0x27b   :  { %v381_v27 = vadd.f32 %v723_v21, %v380_v26 }
 0x27c   :  { %423 = vst [vmem:[%s859_s6 + $0x50] sm:$0xff] %v348_v25  ;;  %v320_v28 = vpop.f32.mrf.mxu1 }
 0x27d   :  { %434 = vst [vmem:[%s859_s6 + $0xa8] sm:$0xff] %v381_v27  ;;  %v321_v29 = vadd.f32 %v723_v21, %v320_v28 }
 0x27f   :  { %414 = vst [vmem:[%s859_s6 + $0x8] sm:$0xff] %v321_v29 }
 0x281   :  { %v350_v30 = vpop.f32.mrf.mxu2 }
 0x282   :  { %v351_v31 = vadd.f32 %v723_v21, %v350_v30  ;;  %v383_v32 = vpop.f32.mrf.mxu3 }
 0x283   :  { %v384_v33 = vadd.f32 %v723_v21, %v383_v32 }
 0x284   :  { %424 = vst [vmem:[%s859_s6 + $0x58] sm:$0xff] %v351_v31  ;;  %v323_v34 = vpop.f32.mrf.mxu1 }
 0x285   :  { %435 = vst [vmem:[%s859_s6 + $0xb0] sm:$0xff] %v384_v33  ;;  %v324_v35 = vadd.f32 %v723_v21, %v323_v34 }
 0x287   :  { %415 = vst [vmem:[%s859_s6 + $0x10] sm:$0xff] %v324_v35 }
 0x289   :  { %v353_v36 = vpop.f32.mrf.mxu2 }
 0x28a   :  { %v354_v37 = vadd.f32 %v723_v21, %v353_v36  ;;  %v386_v38 = vpop.f32.mrf.mxu3 }
 0x28b   :  { %v387_v39 = vadd.f32 %v723_v21, %v386_v38 }
 0x28c   :  { %425 = vst [vmem:[%s859_s6 + $0x60] sm:$0xff] %v354_v37  ;;  %v326_v40 = vpop.f32.mrf.mxu1 }
 0x28d   :  { %436 = vst [vmem:[%s859_s6 + $0xb8] sm:$0xff] %v387_v39  ;;  %v327_v41 = vadd.f32 %v723_v21, %v326_v40 }
 0x28f   :  { %416 = vst [vmem:[%s859_s6 + $0x18] sm:$0xff] %v327_v41 }
 0x291   :  { %v356_v42 = vpop.f32.mrf.mxu2 }
 0x292   :  { %v357_v43 = vadd.f32 %v723_v21, %v356_v42  ;;  %v389_v44 = vpop.f32.mrf.mxu3 }
 0x293   :  { %v390_v45 = vadd.f32 %v723_v21, %v389_v44 }
 0x294   :  { %426 = vst [vmem:[%s859_s6 + $0x68] sm:$0xff] %v357_v43  ;;  %v329_v46 = vpop.f32.mrf.mxu1 }
 0x295   :  { %437 = vst [vmem:[%s859_s6 + $0xc0] sm:$0xff] %v390_v45  ;;  %v330_v47 = vadd.f32 %v723_v21, %v329_v46 }
 0x297   :  { %417 = vst [vmem:[%s859_s6 + $0x20] sm:$0xff] %v330_v47 }
 0x299   :  { %v359_v48 = vpop.f32.mrf.mxu2 }
 0x29a   :  { %v360_v49 = vadd.f32 %v723_v21, %v359_v48  ;;  %v392_v50 = vpop.f32.mrf.mxu3 }
 0x29b   :  { %v393_v51 = vadd.f32 %v723_v21, %v392_v50 }
 0x29c   :  { %427 = vst [vmem:[%s859_s6 + $0x70] sm:$0xff] %v360_v49  ;;  %v332_v52 = vpop.f32.mrf.mxu1 }
 0x29d   :  { %438 = vst [vmem:[%s859_s6 + $0xc8] sm:$0xff] %v393_v51  ;;  %v333_v53 = vadd.f32 %v723_v21, %v332_v52 }
 0x29f   :  { %418 = vst [vmem:[%s859_s6 + $0x28] sm:$0xff] %v333_v53 }
 0x2a1   :  { %v362_v54 = vpop.f32.mrf.mxu2 }
 0x2a2   :  { %v363_v55 = vadd.f32 %v723_v21, %v362_v54  ;;  %v395_v56 = vpop.f32.mrf.mxu3 }
 0x2a3   :  { %v396_v57 = vadd.f32 %v723_v21, %v395_v56 }
 0x2a4   :  { %428 = vst [vmem:[%s859_s6 + $0x78] sm:$0xff] %v363_v55  ;;  %v335_v58 = vpop.f32.mrf.mxu1 }
 0x2a5   :  { %439 = vst [vmem:[%s859_s6 + $0xd0] sm:$0xff] %v396_v57  ;;  %v336_v59 = vadd.f32 %v723_v21, %v335_v58 }
 0x2a7   :  { %419 = vst [vmem:[%s859_s6 + $0x30] sm:$0xff] %v336_v59 }
 0x2a9   :  { %v365_v60 = vpop.f32.mrf.mxu2 }
 0x2aa   :  { %v366_v61 = vadd.f32 %v723_v21, %v365_v60  ;;  %v398_v62 = vpop.f32.mrf.mxu3 }
 0x2ab   :  { %v399_v63 = vadd.f32 %v723_v21, %v398_v62 }
 0x2ac   :  { %429 = vst [vmem:[%s859_s6 + $0x80] sm:$0xff] %v366_v61  ;;  %v338_v0 = vpop.f32.mrf.mxu1 }
 0x2ad   :  { %440 = vst [vmem:[%s859_s6 + $0xd8] sm:$0xff] %v399_v63  ;;  %v339_v1 = vadd.f32 %v723_v21, %v338_v0 }
 0x2af   :  { %420 = vst [vmem:[%s859_s6 + $0x38] sm:$0xff] %v339_v1 }
 0x2b1   :  { %v368_v2 = vpop.f32.mrf.mxu2 }
 0x2b2   :  { %v369_v3 = vadd.f32 %v723_v21, %v368_v2  ;;  %v401_v4 = vpop.f32.mrf.mxu3 }
 0x2b3   :  { %v402_v5 = vadd.f32 %v723_v21, %v401_v4 }
 0x2b4   :  { %430 = vst [vmem:[%s859_s6 + $0x88] sm:$0xff] %v369_v3  ;;  %v341_v6 = vpop.f32.mrf.mxu1 }
 0x2b5   :  { %441 = vst [vmem:[%s859_s6 + $0xe0] sm:$0xff] %v402_v5  ;;  %v342_v7 = vadd.f32 %v723_v21, %v341_v6 }
 0x2b7   :  { %421 = vst [vmem:[%s859_s6 + $0x40] sm:$0xff] %v342_v7 }
 0x2b9   :  { %v371_v8 = vpop.f32.mrf.mxu2 }
 0x2ba   :  { %v372_v9 = vadd.f32 %v723_v21, %v371_v8  ;;  %v404_v10 = vpop.f32.mrf.mxu3 }
 0x2bb   :  { %v405_v11 = vadd.f32 %v723_v21, %v404_v10 }
 0x2bc   :  { %431 = vst [vmem:[%s859_s6 + $0x90] sm:$0xff] %v372_v9  ;;  %v344_v12 = vpop.f32.mrf.mxu1 }
 0x2bd   :  { %442 = vst [vmem:[%s859_s6 + $0xe8] sm:$0xff] %v405_v11  ;;  %v345_v13 = vadd.f32 %v723_v21, %v344_v12 }
 0x2bf   :  { %422 = vst [vmem:[%s859_s6 + $0x48] sm:$0xff] %v345_v13 }
 0x2c1   :  { %v374_v14 = vpop.f32.mrf.mxu2 }
 0x2c2   :  { %v375_v15 = vadd.f32 %v723_v21, %v374_v14  ;;  %v407_v16 = vpop.f32.mrf.mxu3 }
 0x2c3   :  { %v408_v17 = vadd.f32 %v723_v21, %v407_v16 }
 0x2c4   :  { %432 = vst [vmem:[%s859_s6 + $0x98] sm:$0xff] %v375_v15 }
 0x2c5   :  { %443 = vst [vmem:[%s859_s6 + $0xf0] sm:$0xff] %v408_v17 }
 0x2c9   :  { %v377_v18 = vpop.f32.mrf.mxu2 }
 0x2ca   :  { %v378_v19 = vadd.f32 %v723_v21, %v377_v18  ;;  %v410_v20 = vpop.f32.mrf.mxu3 }
 0x2cb   :  { %v411_v22 = vadd.f32 %v723_v21, %v410_v20 }
 0x2cc   :  { %433 = vst [vmem:[%s859_s6 + $0xa0] sm:$0xff] %v378_v19 }
 0x2cd   :  { %444 = vst [vmem:[%s859_s6 + $0xf8] sm:$0xff] %v411_v22 }

</bundles_post_ra>
